<compile_context>
chip_gen: v7x
topology: tpu7x:2x2x1
jax: 0.10.0
libtpu: 0.0.40
codegen_flags: <defaults>
</compile_context>

<pallas_src>
import functools

import jax
import jax.numpy as jnp
from jax.experimental import pallas as pl
from jax.experimental.pallas import tpu as pltpu


def _round_up(x, m):
    return (x + m - 1) // m * m


def _choose_packing(C, HW, sublanes):
    """Fold a factor `hs` of HW into the channel axis: (C, HW) -> (C*hs, HW//hs).

    Goal: second-to-last dim a multiple of the sublane count (8 for f32,
    16 for bf16) and last dim a multiple of 128 lanes, so vregs are dense.
    """
    best_hs, best_score = 1, -1
    for hs in range(1, min(HW, 128) + 1):
        if HW % hs:
            continue
        Cp, L = C * hs, HW // hs
        score = 0
        if Cp % sublanes == 0:
            score += 4
        elif Cp >= sublanes:
            score += 2
        if L % 128 == 0:
            score += 3
        if L >= 128:
            score += 1
        if score > best_score:  # ties -> smaller hs (keeps the lane dim long)
            best_hs, best_score = hs, score
    return best_hs


# --------------------------------------------------------------------------
# Path A: whole-sample fused kernel (1 HBM read + 1 HBM write per element).
# --------------------------------------------------------------------------
def _layernorm_fused_kernel(x_ref, gamma_ref, beta_ref, o_ref, *, n, eps):
    x = x_ref[...].astype(jnp.float32)                       # (Bt, Cp, L)

    def _rsum(v):                                            # -> (Bt, 1, 1)
        return jnp.sum(jnp.sum(v, axis=2, keepdims=True), axis=1, keepdims=True)

    # One-pass moments (f32 accumulation).
    s = _rsum(x)
    ss = _rsum(x * x)
    mean = s * (1.0 / n)
    var = (ss - s * s * (1.0 / n)) * (1.0 / (n - 1))         # Bessel (N-1)
    # Per-sample reciprocal only (the per-element divide is gone); exact,
    # approx=True is unnecessary here since this is O(Bt) values, not O(n).
    inv = pl.reciprocal(jnp.sqrt(var) + eps, approx=False)   # (Bt, 1, 1)

    gamma = gamma_ref[...].astype(jnp.float32)               # (Cp, 1)
    beta = beta_ref[...].astype(jnp.float32)                 # (Cp, 1)
    scale = gamma[None] * inv                                # (Bt, Cp, 1)
    bias = beta[None] - mean * scale                         # (Bt, Cp, 1)

    o_ref[...] = (x * scale + bias).astype(o_ref.dtype)      # single fused sweep


# --------------------------------------------------------------------------
# Path B: lane-tiled two-pass pipeline for samples too big for VMEM.
# --------------------------------------------------------------------------
def _stats_kernel(x_ref, gamma_ref, beta_ref, scale_ref, bias_ref,
                  s_ref, ss_ref, *, n, eps):
    """Pass 1: accumulate sum / sum-of-squares over lane tiles, then fold
    mean / std / gamma / beta into per-channel scale & bias."""
    k = pl.program_id(1)

    @pl.when(k == 0)
    def _init():
        s_ref[...] = jnp.zeros_like(s_ref)
        ss_ref[...] = jnp.zeros_like(ss_ref)

    x = x_ref[...].astype(jnp.float32)                        # (1, Cp, TL)
    s_ref[...] += jnp.sum(jnp.sum(x, axis=2, keepdims=True), axis=1)        # (1,1)
    ss_ref[...] += jnp.sum(jnp.sum(x * x, axis=2, keepdims=True), axis=1)   # (1,1)

    @pl.when(k == pl.num_programs(1) - 1)
    def _finalize():
        s = s_ref[...]                                        # (1, 1)
        ss = ss_ref[...]
        mean = s * (1.0 / n)
        var = (ss - s * s * (1.0 / n)) * (1.0 / (n - 1))
        inv = pl.reciprocal(jnp.sqrt(var) + eps, approx=False)
        gamma = gamma_ref[...].astype(jnp.float32)            # (Cp, 1)
        beta = beta_ref[...].astype(jnp.float32)
        scale = gamma * inv                                   # (Cp, 1)
        bias = beta - mean * scale                            # (Cp, 1)
        scale_ref[...] = scale[None]                          # (1, Cp, 1)
        bias_ref[...] = bias[None]


def _apply_kernel(x_ref, scale_ref, bias_ref, o_ref):
    """Pass 2: o = x * scale + bias (fused per-channel normalize + affine)."""
    x = x_ref[...].astype(jnp.float32)                        # (1, Cp, TL)
    o_ref[...] = (x * scale_ref[...] + bias_ref[...]).astype(o_ref.dtype)


# --------------------------------------------------------------------------
# Wrapper
# --------------------------------------------------------------------------
def layer_norm(x, gamma=None, beta=None, *, eps=1e-8, affine=True,
               force_tiled=False, lane_tile=None):
    """LayerNorm matching the reference module's forward.  x: (B, C, H, W)."""
    B, C, H, W = x.shape
    HW = H * W
    n = C * HW                                   # true per-sample element count
    itemsize = jnp.dtype(x.dtype).itemsize
    sublanes = max(8, 32 // itemsize)            # 8 for f32, 16 for bf16

    # ---- layout: pack sublanes (fold part of HW into channels) --------------
    hs = _choose_packing(C, HW, sublanes)
    Cp, L = C * hs, HW // hs
    x2 = x.reshape(B, Cp, L)

    if affine:
        gamma_p = jnp.repeat(gamma.astype(jnp.float32), hs).reshape(Cp, 1)
        beta_p = jnp.repeat(beta.astype(jnp.float32), hs).reshape(Cp, 1)
    else:
        gamma_p = jnp.ones((Cp, 1), jnp.float32)
        beta_p = jnp.zeros((Cp, 1), jnp.float32)

    # ---- pick path: whole-sample fused vs. lane-tiled two-pass ---------------
    L128 = _round_up(L, 128)
    # in+out double-buffered + f32 temporaries, per sample
    per_sample_est = Cp * L128 * (4 * itemsize + 2 * 4)
    whole_budget = 40 * 1024 * 1024              # conservative across v5e/v6e/v7x
    use_whole = (not force_tiled) and per_sample_est <= whole_budget

    if use_whole:
        L_pad = L128
        if L_pad != L:
            # zero pads do not change sum / sum-of-squares; pads sliced off below
            x2 = jnp.pad(x2, ((0, 0), (0, 0), (0, L_pad - L)))
        # Batch tiny samples per grid step (amortize ~0.35us/step) but keep the
        # parallel grid extent >= 2 so both v7x TensorCores stay busy.
        Bt = 1
        for cand in range(2, B + 1):
            if B % cand or cand * per_sample_est > (4 << 20) or B // cand < 2:
                continue
            Bt = cand
        vmem_limit = int(min(48 << 20, max(16 << 20, Bt * per_sample_est + (2 << 20))))

        out = pl.pallas_call(
            functools.partial(_layernorm_fused_kernel, n=n, eps=eps),
            out_shape=jax.ShapeDtypeStruct((B, Cp, L_pad), x.dtype),
            grid_spec=pltpu.PrefetchScalarGridSpec(
                num_scalar_prefetch=0,
                grid=(B // Bt,),
                in_specs=[
                    pl.BlockSpec((Bt, Cp, L_pad), lambda b: (b, 0, 0)),
                    pl.BlockSpec((Cp, 1), lambda b: (0, 0)),
                    pl.BlockSpec((Cp, 1), lambda b: (0, 0)),
                ],
                out_specs=pl.BlockSpec((Bt, Cp, L_pad), lambda b: (b, 0, 0)),
            ),
            compiler_params=pltpu.CompilerParams(
                dimension_semantics=("parallel",),
                vmem_limit_bytes=vmem_limit,
            ),
        )(x2, gamma_p, beta_p)
    else:
        # TODO(synk): extremely channel-heavy samples (huge Cp, tiny HW) would
        # additionally need tiling along the packed-channel axis.
        if lane_tile is None:
            target = 512 * 1024                  # ~512 KiB f32 x-tile sweet spot
            TL = max(128, (target // (Cp * 4)) // 128 * 128)
        else:
            TL = max(128, _round_up(lane_tile, 128))
        TL = min(TL, _round_up(L, 128))
        L_pad = _round_up(L, TL)
        if L_pad != L:
            x2 = jnp.pad(x2, ((0, 0), (0, 0), (0, L_pad - L)))
        nT = L_pad // TL
        vmem_limit = int(min(48 << 20, max(16 << 20, 8 * Cp * TL * 4)))

        scale, bias = pl.pallas_call(
            functools.partial(_stats_kernel, n=n, eps=eps),
            out_shape=(jax.ShapeDtypeStruct((B, Cp, 1), jnp.float32),
                       jax.ShapeDtypeStruct((B, Cp, 1), jnp.float32)),
            grid_spec=pltpu.PrefetchScalarGridSpec(
                num_scalar_prefetch=0,
                grid=(B, nT),
                in_specs=[
                    pl.BlockSpec((1, Cp, TL), lambda b, k: (b, 0, k)),
                    pl.BlockSpec((Cp, 1), lambda b, k: (0, 0)),
                    pl.BlockSpec((Cp, 1), lambda b, k: (0, 0)),
                ],
                out_specs=[
                    pl.BlockSpec((1, Cp, 1), lambda b, k: (b, 0, 0)),
                    pl.BlockSpec((1, Cp, 1), lambda b, k: (b, 0, 0)),
                ],
                scratch_shapes=[pltpu.VMEM((1, 1), jnp.float32),
                                pltpu.VMEM((1, 1), jnp.float32)],
            ),
            compiler_params=pltpu.CompilerParams(
                dimension_semantics=("parallel", "arbitrary"),
                vmem_limit_bytes=vmem_limit,
            ),
        )(x2, gamma_p, beta_p)

        out = pl.pallas_call(
            _apply_kernel,
            out_shape=jax.ShapeDtypeStruct((B, Cp, L_pad), x.dtype),
            grid_spec=pltpu.PrefetchScalarGridSpec(
                num_scalar_prefetch=0,
                grid=(B, nT),
                in_specs=[
                    pl.BlockSpec((1, Cp, TL), lambda b, k: (b, 0, k)),
                    pl.BlockSpec((1, Cp, 1), lambda b, k: (b, 0, 0)),
                    pl.BlockSpec((1, Cp, 1), lambda b, k: (b, 0, 0)),
                ],
                out_specs=pl.BlockSpec((1, Cp, TL), lambda b, k: (b, 0, k)),
            ),
            compiler_params=pltpu.CompilerParams(
                dimension_semantics=("parallel", "parallel"),
                vmem_limit_bytes=vmem_limit,
            ),
        )(x2, scale, bias)

    return out[:, :, :L].reshape(B, C, H, W)


if __name__ == "__main__":
    key = jax.random.PRNGKey(0)
    kx, kg, kx2 = jax.random.split(key, 3)

    def reference(x, gamma, beta, eps=1e-8):
        B = x.shape[0]
        xf = x.reshape(B, -1)
        n = xf.shape[1]
        mean = xf.mean(axis=1)
        var = ((xf - mean[:, None]) ** 2).sum(axis=1) / (n - 1)   # Bessel
        std = jnp.sqrt(var)
        bshape = (B,) + (1,) * (x.ndim - 1)
        y = (x - mean.reshape(bshape)) / (std.reshape(bshape) + eps)
        pshape = (1, -1) + (1,) * (x.ndim - 2)
        return y * gamma.reshape(pshape) + beta.reshape(pshape)

    # Module-sized test: B=2, C=4 feature maps of 16x16 (whole-sample path).
    B, C, H, W = 2, 4, 16, 16
    x = jax.random.normal(kx, (B, C, H, W), dtype=jnp.float32)
    # Parameter init mirroring the module: gamma ~ U[0,1), beta = zeros.
    gamma = jax.random.uniform(kg, (C,), dtype=jnp.float32)
    beta = jnp.zeros((C,), dtype=jnp.float32)

    y = jax.block_until_ready(layer_norm(x, gamma, beta, eps=1e-8, affine=True))
    ref = reference(x, gamma, beta)
    assert jnp.allclose(y, ref, atol=2e-5, rtol=2e-5), float(jnp.max(jnp.abs(y - ref)))

    # Also exercise the lane-tiled two-pass path (used for VMEM-exceeding samples).
    xb = jax.random.normal(kx2, (2, 4, 32, 32), dtype=jnp.float32)
    yb = jax.block_until_ready(
        layer_norm(xb, gamma, beta, eps=1e-8, affine=True,
                   force_tiled=True, lane_tile=128))
    refb = reference(xb, gamma, beta)
    assert jnp.allclose(yb, refb, atol=2e-5, rtol=2e-5), float(jnp.max(jnp.abs(yb - refb)))

    print("KERNEL_OK")
</pallas_src>

<mosaic_0001>
module attributes {stable_mosaic.version = 11 : i64} {
  func.func @_layernorm_fused_kernel(%arg0: i32, %arg1: memref<1x8x128xf32, #tpu.memory_space<vmem>>, %arg2: memref<8x1xf32, #tpu.memory_space<vmem>>, %arg3: memref<8x1xf32, #tpu.memory_space<vmem>>, %arg4: memref<1x8x128xf32, #tpu.memory_space<vmem>>) attributes {dimension_semantics = [#tpu.dimension_semantics<parallel>], iteration_bounds = array<i64: 2>, scalar_prefetch = 0 : i64, scratch_operands = 0 : i64, tpu.core_type = #tpu.core_type<tc>, window_params = [{transform_indices = @transform_0, window_bounds = array<i64: 1, 8, 128>}, {pipeline_mode = #tpu.pipeline_mode<synchronous>, transform_indices = @transform_1, window_bounds = array<i64: 8, 1>}, {pipeline_mode = #tpu.pipeline_mode<synchronous>, transform_indices = @transform_2, window_bounds = array<i64: 8, 1>}, {transform_indices = @transform_3, window_bounds = array<i64: 1, 8, 128>}]} {
    %c0 = arith.constant 0 : index
    %c0_0 = arith.constant 0 : index
    %c0_1 = arith.constant 0 : index
    %0 = vector.load %arg1[%c0, %c0_0, %c0_1] : memref<1x8x128xf32, #tpu.memory_space<vmem>>, vector<1x8x128xf32>
    %cst = arith.constant dense<0.000000e+00> : vector<1x8xf32>
    %1 = vector.multi_reduction <add>, %0, %cst [2] : vector<1x8x128xf32> to vector<1x8xf32>
    %2 = vector.shape_cast %1 : vector<1x8xf32> to vector<1x8x1xf32>
    %cst_2 = arith.constant dense<0.000000e+00> : vector<1x1xf32>
    %3 = vector.multi_reduction <add>, %2, %cst_2 [1] : vector<1x8x1xf32> to vector<1x1xf32>
    %4 = vector.shape_cast %3 : vector<1x1xf32> to vector<1x1x1xf32>
    %5 = arith.mulf %0, %0 : vector<1x8x128xf32>
    %cst_3 = arith.constant dense<0.000000e+00> : vector<1x8xf32>
    %6 = vector.multi_reduction <add>, %5, %cst_3 [2] : vector<1x8x128xf32> to vector<1x8xf32>
    %7 = vector.shape_cast %6 : vector<1x8xf32> to vector<1x8x1xf32>
    %cst_4 = arith.constant dense<0.000000e+00> : vector<1x1xf32>
    %8 = vector.multi_reduction <add>, %7, %cst_4 [1] : vector<1x8x1xf32> to vector<1x1xf32>
    %9 = vector.shape_cast %8 : vector<1x1xf32> to vector<1x1x1xf32>
    %cst_5 = arith.constant 9.765625E-4 : f32
    %10 = vector.broadcast %cst_5 : f32 to vector<1x1x1xf32>
    %11 = arith.mulf %4, %10 : vector<1x1x1xf32>
    %12 = arith.mulf %4, %4 : vector<1x1x1xf32>
    %cst_6 = arith.constant 9.765625E-4 : f32
    %13 = vector.broadcast %cst_6 : f32 to vector<1x1x1xf32>
    %14 = arith.mulf %12, %13 : vector<1x1x1xf32>
    %15 = arith.subf %9, %14 : vector<1x1x1xf32>
    %cst_7 = arith.constant 9.77517105E-4 : f32
    %16 = vector.broadcast %cst_7 : f32 to vector<1x1x1xf32>
    %17 = arith.mulf %15, %16 : vector<1x1x1xf32>
    %18 = math.sqrt %17 : vector<1x1x1xf32>
    %cst_8 = arith.constant 9.99999993E-9 : f32
    %19 = vector.broadcast %cst_8 : f32 to vector<1x1x1xf32>
    %20 = arith.addf %18, %19 : vector<1x1x1xf32>
    %21 = tpu.reciprocal %20 : vector<1x1x1xf32> -> vector<1x1x1xf32>
    %c0_9 = arith.constant 0 : index
    %c0_10 = arith.constant 0 : index
    %22 = vector.load %arg2[%c0_9, %c0_10] : memref<8x1xf32, #tpu.memory_space<vmem>>, vector<8x1xf32>
    %c0_11 = arith.constant 0 : index
    %c0_12 = arith.constant 0 : index
    %23 = vector.load %arg3[%c0_11, %c0_12] : memref<8x1xf32, #tpu.memory_space<vmem>>, vector<8x1xf32>
    %24 = vector.shape_cast %22 : vector<8x1xf32> to vector<1x8x1xf32>
    %25 = vector.broadcast %21 : vector<1x1x1xf32> to vector<1x8x1xf32>
    %26 = arith.mulf %24, %25 : vector<1x8x1xf32>
    %27 = vector.shape_cast %23 : vector<8x1xf32> to vector<1x8x1xf32>
    %28 = vector.broadcast %11 : vector<1x1x1xf32> to vector<1x8x1xf32>
    %29 = arith.mulf %28, %26 : vector<1x8x1xf32>
    %30 = arith.subf %27, %29 : vector<1x8x1xf32>
    %31 = vector.broadcast %26 : vector<1x8x1xf32> to vector<1x8x128xf32>
    %32 = arith.mulf %0, %31 : vector<1x8x128xf32>
    %33 = vector.broadcast %30 : vector<1x8x1xf32> to vector<1x8x128xf32>
    %34 = arith.addf %32, %33 : vector<1x8x128xf32>
    %c0_13 = arith.constant 0 : index
    %c0_14 = arith.constant 0 : index
    %c0_15 = arith.constant 0 : index
    %35 = vector.load %arg4[%c0_13, %c0_14, %c0_15] : memref<1x8x128xf32, #tpu.memory_space<vmem>>, vector<1x8x128xf32>
    tpu.vector_store %arg4[%c0_13, %c0_14, %c0_15], %34 {strides = array<i32>} : memref<1x8x128xf32, #tpu.memory_space<vmem>>, vector<1x8x128xf32>,
    return
  }
  func.func @transform_0(%arg0: i32) -> (i32, i32, i32) {
    %c0_i32 = arith.constant 0 : i32
    %c0_i32_0 = arith.constant 0 : i32
    %c0_i32_1 = arith.constant 0 : i32
    return %arg0, %c0_i32, %c0_i32_0 : i32, i32, i32
  }
  func.func @transform_1(%arg0: i32) -> (i32, i32) {
    %c0_i32 = arith.constant 0 : i32
    %c0_i32_0 = arith.constant 0 : i32
    %c0_i32_1 = arith.constant 0 : i32
    return %c0_i32, %c0_i32_0 : i32, i32
  }
  func.func @transform_2(%arg0: i32) -> (i32, i32) {
    %c0_i32 = arith.constant 0 : i32
    %c0_i32_0 = arith.constant 0 : i32
    %c0_i32_1 = arith.constant 0 : i32
    return %c0_i32, %c0_i32_0 : i32, i32
  }
  func.func @transform_3(%arg0: i32) -> (i32, i32, i32) {
    %c0_i32 = arith.constant 0 : i32
    %c0_i32_0 = arith.constant 0 : i32
    %c0_i32_1 = arith.constant 0 : i32
    return %arg0, %c0_i32, %c0_i32_0 : i32, i32, i32
  }
}

</mosaic_0001>

<bundles_post_ra>
// kernel: tpu_custom_call.1
= control target key start
LH: loop header
LB: loop body
LE: loop exit
PB: predicated region body
PF: predicated region fallthrough
CT: control target
= control target key end

     0   :  { %8 = vsyncpa [#allocation3], 0  ;;  %s537_s0 = inlined_call_operand.vmem [shape: f32[2,8,128], index: 0, kind: input, shape index: {}]   ;;  %s538_s1 = inlined_call_operand.vmem [shape: f32[8,1], index: 1, kind: input, shape index: {}]   ;;  %s539_s2 = inlined_call_operand.vmem [shape: f32[8,1], index: 2, kind: input, shape index: {}]   ;;  %s540_s3 = inlined_call_operand.hbm [shape: f32[2,8,128], index: 3, kind: output, shape index: {}]  }
   0x1   :  { %10 = vsyncpa [#allocation3 + $0x1], 0  ;;  %s431_s12 = smov 0   ;;  %s433_s13 = smov 0  }
   0x2   :  { %s435_s14 = smov 0   ;;  %s437_s15 = smov 0  }
   0x3 LB: > { %s452_s16 = sadd.s32 4294967295, %s407_s15   ;;  %s289_s17 = sadd.s32 4294967294, %s407_s15   ;;  %s407_s15 = sphi %s437_s15, %s546_s15   ;;  %s403_s14 = sphi %s435_s14, %s545_s14   ;;  %s399_s13 = sphi %s433_s13, %s544_s13   ;;  %s395_s12 = sphi %s431_s12, %s543_s12  }
   0x4   : > { %s456_s18 = sadd.s32 1, %s407_s15   ;;  %s91_s19 = sadd.s32 1, %s403_s14 }
   0x5   : > { %s88_s20 = ssub.s32 %s407_s15, %s456_s18  ;;  %p101_p0 = scmp.ne.s32.totalorder %s403_s14, %s399_s13 }
   0x6   : > { %p89_p1 = scmp.eq.s32.totalorder %s88_s20, 0  ;;  %p102_p2 = scmp.eq.s32.totalorder %s452_s16, 1 }
   0x7   : > { %p107_p3 = scmp.ne.s32.totalorder %s399_s13, %s395_s12  ;;  %p108_p4 = scmp.eq.s32.totalorder %s289_s17, 1 }
   0x8   : > { %s467_s21 = scalar_select %p89_p1, %s403_s14, %s91_s19  }
   0x9   : > { %p469_p5 = por %p102_p2, %p101_p0  ;;  %p473_p6 = por %p108_p4, %p107_p3 }
   0xa   : > { %p292_p7 = scmp.ge.s32.totalorder %s407_s15, 1  ;;  %p139_p8 = scmp.lt.s32.totalorder %s407_s15, 3 }
   0xc   : > { %p140_p9 = pnand %p292_p7, %p139_p8 }
   0xd   : > { %p162_p10 = scmp.lt.s32.totalorder (!%p140_p9), %s452_s16, 1  ;;  %v409_v2 = vmov (!%p140_p9), 0   ;;  %v198_v27 = vld [vmem:[%s538_s1] sm:$0xff] (!%p140_p9)  ;;  %s159_s6 = sand.u32 (!%p140_p9), 1, %s399_s13  }
   0xe   : > { %143 = sbr.rel (%p140_p9) target bundleno = 366 (0x16e), region = 32  ;;  %339 = vset.pattern.permute.xlu1 (!%p140_p9), %v409_v2  ;;  %340 = vset.pattern.permute.xlu0 (!%p140_p9), %v409_v2  ;;  %v199_v31 = vld [vmem:[%s539_s2] sm:$0xff] (!%p140_p9)  ;;  %s293_s7 = sshll.u32 (!%p140_p9), %s159_s6, 3 }
   0xf   : > { %s296_s8 = sshll.u32 (!%p140_p9), %s452_s16, 7  ;;  %s161_s9 = scalar_lea.vmem (!%p140_p9), [#allocation2], %s293_s7 }
  0x10   : > { %s230_s10 = sshll.u32 (!%p140_p9), %s161_s9, 4  ;;  %s495_s19 = scalar_lea.hbm (!%p140_p9), %s540_s3, %s296_s8  ;;  %s497_s10 = int_to_ptr.vmem [resolvable:$true] %s230_s10 }
  0x11   : > { %s217_s20 = scalar_lea.sflag (!%p140_p9), [#allocation3], %s159_s6 }
  0x15   : > { %s163_s24 = scalar_select %p162_p10, %s452_s16, 1 }
  0x16   : > { %s410_s16 = smov [#allocation2]  }
  0x17   : > { %s294_s25 = sshll.u32 %s163_s24, 3  ;;  %s345_s24 = scalar_lea.vmem %s497_s10, 128 }
  0x18   : > { %s165_s28 = scalar_lea.vmem %s537_s0, %s294_s25  ;;  %p346_p11 = scmp.ne.s32.totalorder %s497_s10, %s345_s24 }
  0x19   : > { %v166_v0 = vld [vmem:[%s165_s28] sm:$0xff]  ;;  %s349_s25 = sshll.u32 %s410_s16, 4  ;;  %s350_s25 = int_to_ptr.vmem [resolvable:$false] %s349_s25 }
  0x1a   : > { %167 = vadd.xlane.f32.xlu0 %v166_v0  ;;  %v175_v1 = vmul.f32 %v166_v0, %v166_v0  ;;  %p347_p12 = pnand %p346_p11, %p469_p5  ;;  %s351_s26 = scalar_lea.vmem %s350_s25, 256 }
  0x1b   : > { %p352_p0 = scmp.lt.s32.totalorder %s497_s10, %s350_s25  ;;  %p353_p1 = scmp.lt.s32.totalorder %s351_s26, %s345_s24 }
  0x1c   : > { %p348_p13 = pneg %p347_p12 }
  0x1d   : > { %p354_p2 = por %p353_p1, %p352_p0 }
  0x1e   : > { %176 = vadd.xlane.f32.xlu0 %v175_v1 }
  0x1f   : > { %p355_p3 = pnand %p354_p2, %p348_p13 }
  0xa7   : > { %v168_v3 = vpop.xlane.xlu0 %167 }
  0xa8   : > { %v169_v4 = vrot.slane %v168_v3, 4 }
  0xaa   : > { %v170_v5 = vadd.f32 %v169_v4, %v168_v3 }
  0xab   : > { %v177_v6 = vpop.xlane.xlu0 %176 }
  0xac   : > { %v171_v7 = vrot.slane %v170_v5, 2  ;;  %v178_v8 = vrot.slane %v177_v6, 4 }
  0xae   : > { %v172_v9 = vadd.f32 %v171_v7, %v170_v5  ;;  %v179_v10 = vadd.f32 %v178_v8, %v177_v6 }
  0xb0   : > { %v173_v11 = vrot.slane %v172_v9, 1  ;;  %v180_v12 = vrot.slane %v179_v10, 2 }
  0xb2   : > { %v174_v13 = vadd.f32 %v173_v11, %v172_v9  ;;  %v181_v14 = vadd.f32 %v180_v12, %v179_v10 }
  0xb4   : > { %v185_v15 = vmul.f32 %v174_v13, %v174_v13  ;;  %v182_v16 = vrot.slane %v181_v14, 1  ;;  %v184_v29 = vmul.f32 0.0009765625, %v174_v13 }
  0xb6   : > { %v186_v17 = vmul.f32 0.0009765625, %v185_v15  ;;  %v183_v18 = vadd.f32 %v182_v16, %v181_v14 }
  0xb8   : > { %v187_v19 = vsub.f32 %v183_v18, %v186_v17 }
  0xba   : > { %v188_v20 = vmul.f32 0.0009775171, %v187_v19 }
  0xbc   : > { %341 = vrsqrt.f32 %v188_v20  ;;  %vm191_vm0 = vcmp.eq.f32.partialorder %v188_v20, inf  ;;  %v194_v23 = vand.u32 2147483648, %v188_v20  ;;  %vm193_vm1 = vcmp.eq.f32.partialorder %v188_v20, 0.0 }
  0xc6   : > { %v342_v21 = vpop.eup %341 }
  0xc7   : > { %v190_v22 = vmul.f32 %v342_v21, %v188_v20 }
  0xc9   : > { %v192_v24 = vsel %vm191_vm0, %v188_v20, %v190_v22 }
  0xca   : > { %v195_v25 = vsel %vm193_vm1, %v194_v23, %v192_v24 }
  0xcb   : > { %v196_v26 = vadd.f32 1e-08, %v195_v25 }
  0xcd   : > { %343 = vrcp.f32 %v196_v26 }
  0xd7   : > { %v344_v28 = vpop.eup %343 }
  0xd8   : > { %v200_v30 = vmul.f32 %v344_v28, %v198_v27 }
  0xda   : > { %205 = vperm.xlu1 %339, %v200_v30   ;;  %v201_v32 = vmul.f32 %v200_v30, %v184_v29 }
  0xdc   : > { %v202_v33 = vsub.f32 %v199_v31, %v201_v32 }
  0xde   : > { %211 = vperm.xlu1 %339, %v202_v33  }
 0x159   : > { %v206_v34 = vpop.permute.xlu1 %205 }
 0x15a   : > { %v208_v35 = vmul.f32 %v206_v34, %v166_v0 }
 0x15d   : > { %v212_v36 = vpop.permute.xlu1 %211 }
 0x15e   : > { %v214_v37 = vadd.f32 %v212_v36, %v208_v35 }
 0x160   : > { %215 = vst [vmem:[%s161_s9] sm:$0xff] %v214_v37 }
 0x161   : > { %358 = shalt.err (!%p355_p3)
}
 0x162   : > { %s359_s27 = scalar_lea.hbm %s495_s19, 128  ;;  %s363_s30 = scalar_lea.hbm %s540_s3, 256 }
 0x163   : > { %p360_p4 = scmp.ne.s32.totalorder %s495_s19, %s359_s27  ;;  %p364_p9 = scmp.lt.u32.totalorder %s495_s19, %s540_s3 }
 0x164   : > { %p365_p10 = scmp.lt.u32.totalorder %s363_s30, %s359_s27  ;;  %p367_p12 = scmp.lt.u32.totalorder %s359_s27, %s495_s19 }
 0x165   : > { %p361_p7 = pnand %p360_p4, %p469_p5 }
 0x166   : > { %p366_p11 = por %p365_p10, %p364_p9 }
 0x167   : > { %p362_p8 = pneg %p361_p7 }
 0x168   : > { %p368_p13 = por %p367_p12, %p366_p11 }
 0x16a   : > { %p369_p0 = pnand %p368_p13, %p362_p8 }
 0x16c   : > { %372 = shalt.err (!%p369_p0)
}
 0x16d   : > { %299 = dma.vmem_to_hbm [thread:$0]  (%p469_p5), %s497_s10, 128, %s495_s19, %s217_s20  }
 0x16e PF: > { %p305_p1 = scmp.ge.s32.totalorder %s407_s15, 2  ;;  %s242_s6 = sand.u32 1, %s395_s12  }
 0x16f   : > { %s243_s7 = scalar_lea.sflag [#allocation3], %s242_s6 }
 0x170   : > { %p302_p2 = pnand %p305_p1, %p473_p6 }
 0x172   : > { %390 = dma.done.wait (!%p302_p2), %s243_s7, 128  }
 0x173   : > { %392 = vsyncadd (!%p302_p2), %s243_s7, 4294967168  ;;  %p13_p3 = scmp.ge.s32.totalorder %s456_s18, 4   ;;  %s543_s12 = smov %s399_s13 }
 0x174   : > { %s544_s13 = smov %s403_s14  ;;  %s545_s14 = smov %s467_s21 }
 0x175   : > { %s546_s15 = smov %s456_s18  ;;  %15 = sbr.rel (!%p13_p3) target bundleno = 3 (0x3), region = 67 }
 0x17c   :  { %248 = vsyncpa [#allocation3], 1 }
 0x17d   :  { %250 = vsyncpa [#allocation3 + $0x1], 1 }

</bundles_post_ra>
